<compile_context>
chip_gen: v5e
topology: v5e:2x2
jax: 0.10.0
libtpu: 0.0.40
codegen_flags: <defaults>
</compile_context>

<pallas_src>
import jax
import jax.numpy as jnp
from jax.experimental import pallas as pl
from jax.experimental.pallas import tpu as pltpu


def _round_up(x, m):
    return ((x + m - 1) // m) * m


def _make_bitlinear_kernel(use_int8, k_chunk):
    """Builds the fused (quantize -> matmul -> dequantize) layer-step kernel."""

    def kernel(x_ref, w_ref, g_ref, o_ref):
        # x_ref: (TM, H) f32   token tile (read only at layer-step 0)
        # w_ref: (H, H)  int8  ternary layer weights, [H_in, H_out] layout
        # g_ref: (L,)    f32   per-layer dequant scale gamma/127 (SMEM)
        # o_ref: (TM, H) f32   output tile; VMEM-resident across the layer axis
        #                      (constant block index), doubles as the carry.
        l = pl.program_id(1)

        @pl.when(l == 0)
        def _():
            o_ref[...] = x_ref[...]

        h = o_ref[...]                                            # (TM, H) f32

        # --- per-token int8 absmax activation quantization ---
        absmax = jnp.maximum(jnp.max(jnp.abs(h), axis=-1, keepdims=True), 1e-5)
        hq = jnp.clip(jnp.round(h * (127.0 / absmax)), -128.0, 127.0)

        if use_int8:
            # Native integer MXU path (v5e/v6e): exact with int32 accumulation,
            # no per-step (H, H) int8->bf16 cast or its VMEM temp.
            acc = jnp.dot(
                hq.astype(jnp.int8), w_ref[...],
                preferred_element_type=jnp.int32,
            ).astype(jnp.float32)
        else:
            # bf16 MXU path (v7x has no integer MXU).  Exact here: operands are
            # integer-valued (|hq| <= 128, w in {-1,0,+1}), f32 accumulation.
            # The int8->bf16 weight cast is K-chunked so its VMEM temp is
            # bounded by k_chunk*H*2 bytes at large hidden sizes.
            hb = hq.astype(jnp.bfloat16)
            h_in = w_ref.shape[0]
            if k_chunk >= h_in:
                acc = jnp.dot(hb, w_ref[...].astype(jnp.bfloat16),
                              preferred_element_type=jnp.float32)
            else:
                acc = jnp.zeros((hb.shape[0], w_ref.shape[1]), jnp.float32)
                for c in range(h_in // k_chunk):
                    k0 = c * k_chunk
                    acc = acc + jnp.dot(
                        hb[:, k0:k0 + k_chunk],
                        w_ref[k0:k0 + k_chunk, :].astype(jnp.bfloat16),
                        preferred_element_type=jnp.float32)

        # --- dequant folded into multiplies: y * (gamma/127) * absmax ---
        o_ref[...] = acc * g_ref[l] * absmax

    return kernel


def bitnet_forward(x, weights, *, token_tile=None, use_int8=None):
    """x: [batch, seq, hidden]; weights: [num_layers, H_out, H_in] (f32)."""
    batch, seq, hidden = x.shape
    num_layers = weights.shape[0]
    tokens = batch * seq

    # ---------------- chip detection (int8 MXU availability, VMEM size) ----
    try:
        kind = jax.devices()[0].device_kind.lower()
    except Exception:
        kind = ""
    is_v7 = "v7" in kind
    if use_int8 is None:
        # v5e/v5p/v6e MXUs have a native int8 path; v7x does not (fp8 only),
        # unknown chips fall back to the (also exact) bf16 path.
        use_int8 = (("v5" in kind) or ("v6" in kind)) and not is_v7

    try:
        vmem_cap = int(pltpu.get_tpu_info().vmem_capacity_bytes)
    except Exception:
        vmem_cap = 64 << 20                 # conservative (v7x-sized) fallback
    vmem_budget = int(0.85 * vmem_cap)

    # ---------------- hoisted weight quantization (once, in the wrapper) ---
    w32 = weights.astype(jnp.float32)
    gamma = jnp.mean(jnp.abs(w32), axis=(1, 2)) + 1e-5                  # (L,)
    wq = jnp.clip(jnp.round(w32 / gamma[:, None, None]), -1.0, 1.0)     # ternary
    wq_t = jnp.transpose(wq, (0, 2, 1)).astype(jnp.int8)                # [L,Hin,Hout]
    g127 = (gamma * (1.0 / 127.0)).astype(jnp.float32)                  # dequant scale

    # bf16 path only: K-chunk size for the in-kernel int8->bf16 weight cast.
    if use_int8 or hidden <= 2048 or hidden % 512 != 0:
        k_chunk = hidden
    else:
        k_chunk = 512

    # ---------------- token tile: as large as the VMEM budget allows -------
    def vmem_est(tm):
        x_blk = tm * hidden * 4                        # double-buffered input
        o_blk = tm * hidden * 4                        # double-buffered carry/out
        w_blk = hidden * hidden                        # double-buffered int8 weight
        xq_tmp = tm * hidden * (1 if use_int8 else 2)  # quantized activations
        w_cast = 0 if use_int8 else k_chunk * hidden * 2
        acc_tmp = tm * hidden * 4
        return 2 * x_blk + 2 * o_blk + 2 * w_blk + xq_tmp + w_cast + acc_tmp

    if token_tile is None:
        # int8 doubles the MXU rate, so weight-streaming intensity must double
        # too -> bigger token tile on the int8 path.
        token_tile = 1024 if use_int8 else 512
    tm = max(32, (min(token_tile, _round_up(tokens, 32)) // 32) * 32)
    # v7x has two TensorCores: keep >= 2 tiles on the "parallel" token axis
    # for medium token counts (while keeping tm near the roofline ridge).
    if is_v7 and tokens <= tm and tokens >= 512:
        tm = max(256, _round_up((tokens + 1) // 2, 32))
    while tm > 32 and vmem_est(tm) > vmem_budget:
        tm -= 32

    padded = _round_up(max(tokens, tm), tm)
    num_tiles = padded // tm
    vmem_limit = int(min(max(vmem_est(tm) + (4 << 20), 32 << 20), vmem_budget))

    x2d = x.reshape(tokens, hidden).astype(jnp.float32)
    if padded != tokens:
        x2d = jnp.pad(x2d, ((0, padded - tokens), (0, 0)))

    kernel = _make_bitlinear_kernel(use_int8, k_chunk)

    def build_call(layers_in_grid, flops, bytes_accessed):
        return pl.pallas_call(
            kernel,
            out_shape=jax.ShapeDtypeStruct((padded, hidden), jnp.float32),
            grid_spec=pltpu.PrefetchScalarGridSpec(
                num_scalar_prefetch=0,
                grid=(num_tiles, layers_in_grid),
                in_specs=[
                    pl.BlockSpec((tm, hidden), lambda i, l: (i, 0)),
                    pl.BlockSpec((pl.Squeezed(), hidden, hidden),
                                 lambda i, l: (l, 0, 0)),
                    pl.BlockSpec(memory_space=pltpu.MemorySpace.SMEM),
                ],
                out_specs=pl.BlockSpec((tm, hidden), lambda i, l: (i, 0)),
            ),
            compiler_params=pltpu.CompilerParams(
                # The layer axis must stay innermost and "arbitrary": the
                # output block is the VMEM-resident carry of the layer chain.
                dimension_semantics=("parallel", "arbitrary"),
                vmem_limit_bytes=vmem_limit,
            ),
            cost_estimate=pl.CostEstimate(
                flops=flops, transcendentals=0, bytes_accessed=bytes_accessed),
        )

    # HBM traffic: token-outer streams every layer's H^2 weight once per token
    # tile but keeps activations in VMEM; layer-outer streams each weight once
    # and round-trips activations through HBM.  Layer-outer wins roughly when
    # hidden > 8 * tm with multiple token tiles (prefill-scale, large hidden).
    layer_outer = num_tiles >= 2 and hidden > 8 * tm

    if not layer_outer:
        call = build_call(
            num_layers,
            flops=2 * padded * num_layers * hidden * hidden,
            bytes_accessed=num_tiles * num_layers * hidden * hidden
            + 8 * padded * hidden,
        )
        out2d = call(x2d, wq_t, g127)
    else:
        call = build_call(
            1,
            flops=2 * padded * hidden * hidden,
            bytes_accessed=hidden * hidden + 8 * padded * hidden,
        )
        h = x2d
        for l in range(num_layers):
            h = call(h, wq_t[l:l + 1], g127[l:l + 1])
        out2d = h

    return out2d[:tokens].reshape(batch, seq, hidden).astype(x.dtype)


def bitnet_reference(x, weights):
    """Pure-JAX reference of the same BitLinear stack (for sanity check)."""
    batch, seq, hidden = x.shape
    h = x.reshape(batch * seq, hidden).astype(jnp.float32)
    w32 = weights.astype(jnp.float32)
    for l in range(weights.shape[0]):
        gamma = jnp.mean(jnp.abs(w32[l])) + 1e-5
        wq = jnp.clip(jnp.round(w32[l] / gamma), -1.0, 1.0)
        absmax = jnp.maximum(jnp.max(jnp.abs(h), axis=-1, keepdims=True), 1e-5)
        hq = jnp.clip(jnp.round(h * (127.0 / absmax)), -128.0, 127.0)
        h = (hq @ wq.T) * (gamma * (1.0 / 127.0)) * absmax
    return h.reshape(batch, seq, hidden).astype(x.dtype)


if __name__ == "__main__":
    batch, seq, hidden, num_layers = 2, 16, 128, 3

    key = jax.random.PRNGKey(0)
    kx, kw = jax.random.split(key)
    x = jax.random.normal(kx, (batch, seq, hidden), dtype=jnp.float32)
    # deterministic Linear-like weight init (no bias), shape [L, H_out, H_in]
    weights = 0.02 * jax.random.normal(
        kw, (num_layers, hidden, hidden), dtype=jnp.float32
    )

    out = jax.block_until_ready(bitnet_forward(x, weights))
    ref = bitnet_reference(x, weights)

    assert out.shape == (batch, seq, hidden)
    max_err = float(jnp.max(jnp.abs(out - ref)))
    assert jnp.allclose(out, ref, atol=1e-3, rtol=1e-3), max_err

    print("KERNEL_OK")
</pallas_src>

<mosaic_0001>
module attributes {stable_mosaic.version = 11 : i64} {
  func.func @kernel(%arg0: i32, %arg1: i32, %arg2: memref<32x128xf32, #tpu.memory_space<vmem>>, %arg3: memref<1x128x128xi8, #tpu.memory_space<vmem>>, %arg4: memref<3xf32, #tpu.memory_space<smem>>, %arg5: memref<32x128xf32, #tpu.memory_space<vmem>>) attributes {dimension_semantics = [#tpu.dimension_semantics<parallel>, #tpu.dimension_semantics<arbitrary>], iteration_bounds = array<i64: 1, 3>, scalar_prefetch = 0 : i64, scratch_operands = 0 : i64, tpu.core_type = #tpu.core_type<tc>, window_params = [{transform_indices = @transform_0, window_bounds = array<i64: 32, 128>}, {transform_indices = @transform_1, window_bounds = array<i64: 1, 128, 128>}, {transform_indices = @transform_2, window_bounds = array<i64: 3>}, {transform_indices = @transform_3, window_bounds = array<i64: 32, 128>}]} {
    %c0_i32 = arith.constant 0 : i32
    %0 = arith.cmpi eq, %arg1, %c0_i32 : i32
    %1 = arith.extui %0 : i1 to i32
    %c0_i32_0 = arith.constant 0 : i32
    %2 = arith.cmpi ne, %1, %c0_i32_0 : i32
    scf.if %2 {
      %c0_12 = arith.constant 0 : index
      %c0_13 = arith.constant 0 : index
      %30 = vector.load %arg2[%c0_12, %c0_13] : memref<32x128xf32, #tpu.memory_space<vmem>>, vector<32x128xf32>
      %c0_14 = arith.constant 0 : index
      %c0_15 = arith.constant 0 : index
      %31 = vector.load %arg5[%c0_14, %c0_15] : memref<32x128xf32, #tpu.memory_space<vmem>>, vector<32x128xf32>
      tpu.vector_store %arg5[%c0_14, %c0_15], %30 {strides = array<i32>} : memref<32x128xf32, #tpu.memory_space<vmem>>, vector<32x128xf32>,
    } else {
    }
    %c0 = arith.constant 0 : index
    %c0_1 = arith.constant 0 : index
    %3 = vector.load %arg5[%c0, %c0_1] : memref<32x128xf32, #tpu.memory_space<vmem>>, vector<32x128xf32>
    %4 = math.absf %3 : vector<32x128xf32>
    %cst = arith.constant dense<0xFF800000> : vector<32xf32>
    %5 = vector.multi_reduction <maximumf>, %4, %cst [1] : vector<32x128xf32> to vector<32xf32>
    %6 = vector.shape_cast %5 : vector<32xf32> to vector<32x1xf32>
    %cst_2 = arith.constant 9.99999974E-6 : f32
    %7 = vector.broadcast %cst_2 : f32 to vector<32x1xf32>
    %8 = arith.maximumf %6, %7 : vector<32x1xf32>
    %cst_3 = arith.constant 1.270000e+02 : f32
    %9 = vector.broadcast %cst_3 : f32 to vector<32x1xf32>
    %10 = arith.divf %9, %8 : vector<32x1xf32>
    %11 = vector.broadcast %10 : vector<32x1xf32> to vector<32x128xf32>
    %12 = arith.mulf %3, %11 : vector<32x128xf32>
    %13 = math.roundeven %12 : vector<32x128xf32>
    %cst_4 = arith.constant -1.280000e+02 : f32
    %cst_5 = arith.constant 1.270000e+02 : f32
    %14 = vector.broadcast %cst_4 : f32 to vector<32x128xf32>
    %15 = arith.maximumf %14, %13 : vector<32x128xf32>
    %16 = vector.broadcast %cst_5 : f32 to vector<32x128xf32>
    %17 = arith.minimumf %16, %15 : vector<32x128xf32>
    %18 = arith.truncf %17 : vector<32x128xf32> to vector<32x128xbf16>
    %c0_6 = arith.constant 0 : index
    %c0_7 = arith.constant 0 : index
    %c0_8 = arith.constant 0 : index
    %19 = vector.load %arg3[%c0_6, %c0_7, %c0_8] : memref<1x128x128xi8, #tpu.memory_space<vmem>>, vector<1x128x128xi8>
    %20 = vector.shape_cast %19 : vector<1x128x128xi8> to vector<128x128xi8>
    %21 = arith.sitofp %20 : vector<128x128xi8> to vector<128x128xbf16>
    %cst_9 = arith.constant dense<0.000000e+00> : vector<32x128xf32>
    %22 = tpu.matmul %18, %21, %cst_9 {dimension_numbers = #tpu.dot_dimension_numbers<[1], [0], [0], [1], [0, 0, 1, 1], [], []>} : vector<32x128xbf16>, vector<128x128xbf16>, vector<32x128xf32> -> vector<32x128xf32>
    %23 = arith.index_cast %arg1 : i32 to index
    %24 = memref.load %arg4[%23] : memref<3xf32, #tpu.memory_space<smem>>
    %25 = vector.broadcast %24 : f32 to vector<32x128xf32>
    %26 = arith.mulf %22, %25 : vector<32x128xf32>
    %27 = vector.broadcast %8 : vector<32x1xf32> to vector<32x128xf32>
    %28 = arith.mulf %26, %27 : vector<32x128xf32>
    %c0_10 = arith.constant 0 : index
    %c0_11 = arith.constant 0 : index
    %29 = vector.load %arg5[%c0_10, %c0_11] : memref<32x128xf32, #tpu.memory_space<vmem>>, vector<32x128xf32>
    tpu.vector_store %arg5[%c0_10, %c0_11], %28 {strides = array<i32>} : memref<32x128xf32, #tpu.memory_space<vmem>>, vector<32x128xf32>,
    return
  }
  func.func @transform_0(%arg0: i32, %arg1: i32) -> (i32, i32) {
    %c0_i32 = arith.constant 0 : i32
    %c0_i32_0 = arith.constant 0 : i32
    return %arg0, %c0_i32 : i32, i32
  }
  func.func @transform_1(%arg0: i32, %arg1: i32) -> (i32, i32, i32) {
    %c0_i32 = arith.constant 0 : i32
    %c0_i32_0 = arith.constant 0 : i32
    %c0_i32_1 = arith.constant 0 : i32
    return %arg1, %c0_i32, %c0_i32_0 : i32, i32, i32
  }
  func.func @transform_2(%arg0: i32, %arg1: i32) -> i32 {
    %c0_i32 = arith.constant 0 : i32
    %c0_i32_0 = arith.constant 0 : i32
    return %c0_i32 : i32
  }
  func.func @transform_3(%arg0: i32, %arg1: i32) -> (i32, i32) {
    %c0_i32 = arith.constant 0 : i32
    %c0_i32_0 = arith.constant 0 : i32
    return %arg0, %c0_i32 : i32, i32
  }
}

</mosaic_0001>

<bundles_post_ra>
// kernel: tpu_custom_call.1
= control target key start
LH: loop header
LB: loop body
LE: loop exit
PB: predicated region body
PF: predicated region fallthrough
CT: control target
= control target key end

     0   :  { %8 = vsyncpa [#allocation3], 0  ;;  %s1062_s0 = inlined_call_operand.hbm [shape: f32[32,128], index: 0, kind: input, shape index: {}]   ;;  %s1063_s1 = inlined_call_operand.hbm [shape: s8[3,128,128], index: 1, kind: input, shape index: {}]   ;;  %s1064_s2 = inlined_call_operand.vmem [shape: f32[3], index: 2, kind: input, shape index: {}]   ;;  %s1065_s3 = inlined_call_operand.hbm [shape: f32[32,128], index: 3, kind: output, shape index: {}]  }
   0x1   :  { %9 = vsyncpa [#allocation7], 0 }
   0x2   :  { %11 = vsyncpa [#allocation7 + $0x1], 0 }
   0x3   :  { %12 = vsyncpa [#allocation5], 0 }
   0x4   :  { %13 = vsyncpa [#allocation4], 0  ;;  %s872_s12 = smov 0   ;;  %s874_s13 = smov 0  }
   0x5   :  { %s876_s14 = smov 0   ;;  %s878_s15 = smov 0  }
   0x6   :  { %s880_s16 = smov 0   ;;  %s882_s17 = smov 0  }
   0x7 LB: > { %s525_s18 = sadd.s32 4294967295, %s843_s17   ;;  %p77_p0 = scmp.ne.s32.totalorder %s827_s13, %s823_s12  ;;  %s843_s17 = sphi %s882_s17, %s19_s17   ;;  %s839_s16 = sphi %s880_s16, %s1076_s16   ;;  %s835_s15 = sphi %s878_s15, %s1075_s15   ;;  %s831_s14 = sphi %s876_s14, %s1074_s14   ;;  %s827_s13 = sphi %s874_s13, %s1073_s13   ;;  %s823_s12 = sphi %s872_s12, %s1072_s12  }
   0x8   : > { %p904_p1 = scmp.eq.s32.totalorder %s525_s18, 0  ;;  %p526_p2 = scmp.ge.s32.totalorder %s843_s17, 1 }
   0x9   : > { %p135_p3 = scmp.lt.s32.totalorder %s843_s17, 4  ;;  %s149_s23 = sshll.u32 %s1062_s0, 4  ;;  %s150_s23 = int_to_ptr.hbm [resolvable:$true] %s149_s23 }
   0xa   : > { %p912_p4 = por %p904_p1, %p77_p0  ;;  %s845_s25 = smov [#allocation2]  }
   0xb   : > { %p919_p5 = pnand %p526_p2, %p135_p3  ;;  %s151_s26 = sshll.u32 %s845_s25, 4  ;;  %s152_s26 = int_to_ptr.vmem [resolvable:$true] %s151_s26 }
   0xc   : > { %s164_s29 = sshll.u32 %s1064_s2, 4  ;;  %s846_s30 = smov 128   ;;  %s165_s29 = int_to_ptr.vmem [resolvable:$true] %s164_s29 }
   0xd   : > { %p597_p6 = pneg %p919_p5  ;;  %s847_s4 = smov 8  }
   0xe   : > { %s848_s5 = smov [#allocation8]   ;;  %s28_s6 = sadd.s32 1, %s839_s16 }
   0xf   : > { %p598_p7 = pnand %p597_p6, %p904_p1  ;;  %s64_s7 = sadd.s32 1, %s831_s14 }
  0x10   : > { %p29_p8 = scmp.ge.s32.totalorder %s28_s6, 3  ;;  %p71_p9 = scmp.ne.s32.totalorder %s831_s14, %s827_s13 }
  0x11   : > { %600 = dma.hbm_to_vmem [thread:$0]  (!%p598_p7), %s150_s23, 512, %s152_s26, [#allocation3], %s846_s30, %s846_s30, %s847_s4  }
  0x12   : > { %603 = dma.vmem_to_smem (!%p598_p7), %s165_s29, 16, %s848_s5, [#allocation5]  }
  0x13   : > { %p72_p10 = scmp.eq.s32.totalorder %s843_s17, 0  ;;  %p610_p11 = scmp.lt.s32.totalorder %s843_s17, 3 }
  0x14   : > { %s1078_s6 = smov (%p29_p8, %s28_s6), 0  ;;  %s175_s9 = sand.u32 1, %s831_s14  }
  0x15   : > { %p941_p12 = por %p72_p10, %p71_p9  ;;  %s61_s10 = ssub.s32 %s839_s16, %s1078_s6 }
  0x16   : > { %p62_p13 = scmp.eq.s32.totalorder %s61_s10, 0  ;;  %s530_s11 = sshll.u32 %s175_s9, 5 }
  0x17   : > { %s542_s12 = sshll.u32 %s839_s16, 5  ;;  %s179_s26 = scalar_lea.vmem [#allocation6], %s530_s11 }
  0x18   : > { %s950_s21 = scalar_select %p62_p13, %s831_s14, %s64_s7  }
  0x19   : > { %s184_s25 = scalar_lea.hbm %s1063_s1, %s542_s12  ;;  %s187_s27 = sshll.u32 %s179_s26, 4  ;;  %s188_s27 = int_to_ptr.vmem [resolvable:$true] %s187_s27 }
  0x1a   : > { %s185_s28 = sshll.u32 %s184_s25, 4  ;;  %p605_p0 = pnand %p610_p11, %p941_p12  ;;  %s186_s28 = int_to_ptr.hbm [resolvable:$true] %s185_s28 }
  0x1b   : > { %s176_s29 = scalar_lea.sflag [#allocation7], %s175_s9  ;;  %199 = sbr.rel (%p919_p5) target bundleno = 366 (0x16e), region = 32 }
  0x1c   : > { %607 = dma.hbm_to_vmem [thread:$0]  (!%p605_p0), %s186_s28, 512, %s188_s27, %s176_s29, %s846_s30, %s846_s30, %s847_s4  }
  0x20   : > { %806 = dma.done.wait (%p904_p1), [#allocation3], 512  }
  0x21   : > { %808 = vsyncadd (%p904_p1), [#allocation3], 4294966784  ;;  %s206_s5 = sand.u32 1, %s827_s13  }
  0x22   : > { %s535_s7 = sshll.u32 %s206_s5, 5  ;;  %s207_s8 = scalar_lea.sflag [#allocation7], %s206_s5 }
  0x23   : > { %s969_s10 = scalar_lea.vmem [#allocation6], %s535_s7 }
  0x24   : > { %810 = dma.done.wait (%p912_p4), %s207_s8, 512  }
  0x25   : > { %812 = vsyncadd (%p912_p4), %s207_s8, 4294966784 }
  0x26   : > { %814 = dma.done.wait (%p904_p1), [#allocation5], 16  }
  0x27   : > { %816 = vsyncadd (%p904_p1), [#allocation5], 4294967280 }
  0x28   : > { %221 = sfence }
  0x29   : > { %p537_p2 = scmp.ne.s32.totalorder %s835_s15, 0 }
  0x2b   : > { %240 = sbr.rel (%p537_p2) target bundleno = 53 (0x35), region = 48 }
  0x30   : > { %v241_v0 = vld [vmem:[#allocation2] sm:$0xff]  ;;  %v242_v1 = vld [vmem:[#allocation2 + $0x8] sm:$0xff]  ;;  %v243_v2 = vld [vmem:[#allocation2 + $0x10] sm:$0xff] }
  0x31   : > { %245 = vst [vmem:[#allocation9] sm:$0xff] %v241_v0  ;;  %v244_v3 = vld [vmem:[#allocation2 + $0x18] sm:$0xff] }
  0x32   : > { %246 = vst [vmem:[#allocation9 + $0x8] sm:$0xff] %v242_v1 }
  0x33   : > { %247 = vst [vmem:[#allocation9 + $0x10] sm:$0xff] %v243_v2 }
  0x34   : > { %248 = vst [vmem:[#allocation9 + $0x18] sm:$0xff] %v244_v3 }
  0x35 PF: > { %v350_v12 = vld [vmem:[%s969_s10 + $0x18] sm:$0xff]  ;;  %v349_v22 = vld [vmem:[%s969_s10 + $0x10] sm:$0xff]  ;;  %v348_v31 = vld [vmem:[%s969_s10 + $0x8] sm:$0xff]  ;;  %s410_s19 = sld [smem:[#allocation8 + %s835_s15]]  ;;  %s849_s20 = smov [#allocation9]  }
  0x36   : > { %v365_v13 = vunpack.c.2.s8 %v350_v12  ;;  %v366_v14 = vunpack.c.3.s8 %v350_v12  ;;  %v363_v18 = vunpack.c.0.s8 %v350_v12  ;;  %v364_v19 = vunpack.c.1.s8 %v350_v12  ;;  %v347_v38 = vld [vmem:[%s969_s10] sm:$0xff]  ;;  %s432_s24 = sshll.u32 %s849_s20, 4  ;;  %s434_s9 = sshll.u32 %s1065_s3, 4  ;;  %s433_s24 = int_to_ptr.vmem [resolvable:$true] %s432_s24  ;;  %s435_s9 = int_to_ptr.hbm [resolvable:$true] %s434_s9 }
  0x37   : > { %v361_v24 = vunpack.c.2.s8 %v349_v22  ;;  %v362_v25 = vunpack.c.3.s8 %v349_v22  ;;  %v359_v29 = vunpack.c.0.s8 %v349_v22  ;;  %v360_v30 = vunpack.c.1.s8 %v349_v22  ;;  %p613_p1 = scmp.eq.s32.totalorder %s525_s18, 2  ;;  %s850_s15 = smov 128  }
  0x38   : > { %v982_v5 = vld [vmem:[#allocation9] sm:$0xff]  ;;  %v381_v15 = vcvt.s32.f32 %v365_v13  ;;  %v382_v16 = vcvt.s32.f32 %v366_v14  ;;  %v379_v20 = vcvt.s32.f32 %v363_v18  ;;  %v380_v21 = vcvt.s32.f32 %v364_v19  ;;  %s851_s11 = smov 8  }
  0x39   : > { %v253_v7 = vand.u32 2147483647, %v982_v5  ;;  %v988_v9 = vld [vmem:[#allocation9 + $0x8] sm:$0xff]  ;;  %v377_v26 = vcvt.s32.f32 %v361_v24  ;;  %v378_v27 = vcvt.s32.f32 %v362_v25  ;;  %v357_v32 = vunpack.c.2.s8 %v348_v31 }
  0x3a   : > { %v980_v4 = vld [vmem:[#allocation9 + $0x10] sm:$0xff]  ;;  %v254_v11 = vand.u32 2147483647, %v988_v9  ;;  %v390_v17 = vpack.c.bf16 %v382_v16, %v381_v15  ;;  %v389_v23 = vpack.c.bf16 %v380_v21, %v379_v20  ;;  %v358_v33 = vunpack.c.3.s8 %v348_v31 }
  0x3b   : > { %v255_v6 = vand.u32 2147483647, %v980_v4  ;;  %257 = vmax.xlane.f32.xlu0 %v253_v7  ;;  %v986_v8 = vld [vmem:[#allocation9 + $0x18] sm:$0xff]  ;;  %v388_v28 = vpack.c.bf16 %v378_v27, %v377_v26  ;;  %v375_v34 = vcvt.s32.f32 %v359_v29  ;;  %v376_v35 = vcvt.s32.f32 %v360_v30 }
  0x3c   : > { %v256_v10 = vand.u32 2147483647, %v986_v8  ;;  %391 = vmatpush.bf16.msra.mxu0 %v390_v17  ;;  %543 = vmatpush.bf16.msra.mxu1 %v390_v17  ;;  %v355_v36 = vunpack.c.0.s8 %v348_v31  ;;  %v356_v37 = vunpack.c.1.s8 %v348_v31  ;;  %v373_v39 = vcvt.s32.f32 %v357_v32 }
  0x3d   : > { %261 = vmax.xlane.f32.xlu1 %v255_v6  ;;  %v374_v40 = vcvt.s32.f32 %v358_v33  ;;  %v387_v41 = vpack.c.bf16 %v376_v35, %v375_v34  ;;  %v353_v42 = vunpack.c.2.s8 %v347_v38  ;;  %v354_v43 = vunpack.c.3.s8 %v347_v38 }
  0x3e   : > { %v371_v45 = vcvt.s32.f32 %v355_v36  ;;  %v372_v46 = vcvt.s32.f32 %v356_v37  ;;  %v351_v51 = vunpack.c.0.s8 %v347_v38  ;;  %v352_v55 = vunpack.c.1.s8 %v347_v38 }
  0x3f   : > { %v386_v44 = vpack.c.bf16 %v374_v40, %v373_v39  ;;  %v369_v49 = vcvt.s32.f32 %v353_v42  ;;  %v370_v50 = vcvt.s32.f32 %v354_v43 }
  0x40   : > { %392 = vmatpush.bf16.msra.mxu0 %v389_v23  ;;  %544 = vmatpush.bf16.msra.mxu1 %v389_v23  ;;  %v385_v54 = vpack.c.bf16 %v372_v46, %v371_v45  ;;  %v367_v57 = vcvt.s32.f32 %v351_v51  ;;  %v368_v58 = vcvt.s32.f32 %v352_v55 }
  0x41   : > { %v384_v56 = vpack.c.bf16 %v370_v50, %v369_v49 }
  0x42   : > { %v383_v0 = vpack.c.bf16 %v368_v58, %v367_v57 }
  0x43   : > { %259 = vmax.xlane.f32.xlu0 %v254_v11 }
  0x44   : > { %393 = vmatpush.bf16.msra.mxu0 %v388_v28  ;;  %545 = vmatpush.bf16.msra.mxu1 %v388_v28 }
  0x45   : > { %263 = vmax.xlane.f32.xlu1 %v256_v10 }
  0x48   : > { %394 = vmatpush.bf16.msra.mxu0 %v387_v41  ;;  %546 = vmatpush.bf16.msra.mxu1 %v387_v41 }
  0x4c   : > { %395 = vmatpush.bf16.msra.mxu0 %v386_v44  ;;  %547 = vmatpush.bf16.msra.mxu1 %v386_v44 }
  0x50   : > { %396 = vmatpush.bf16.msra.mxu0 %v385_v54  ;;  %548 = vmatpush.bf16.msra.mxu1 %v385_v54 }
  0x54   : > { %397 = vmatpush.bf16.msra.mxu0 %v384_v56  ;;  %549 = vmatpush.bf16.msra.mxu1 %v384_v56 }
  0x58   : > { %398 = vmatpush.bf16.msra.mxu0 %v383_v0  ;;  %550 = vmatpush.bf16.msra.mxu1 %v383_v0 }
  0xae   : > { %v258_v48 = vpop.xlane.xlu0 %257 }
  0xaf   : > { %v998_v53 = vmax.f32 %v258_v48, 1e-05 }
  0xb0   : > { %v262_v47 = vpop.xlane.xlu1 %261 }
  0xb1   : > { %v996_v52 = vmax.f32 %v262_v47, 1e-05  ;;  %v280_v12 = vand.u32 2147483648, %v998_v53  ;;  %v278_v15 = vand.u32 2147483647, %v998_v53  ;;  %vm274_vm3 = vweird.f32 %v998_v53 }
  0xb3   : > { %670 = vrcp.f32 %v996_v52  ;;  %v310_v7 = vand.u32 2147483648, %v996_v52  ;;  %v308_v13 = vand.u32 2147483647, %v996_v52  ;;  %vm304_vm2 = vweird.f32 %v996_v52 }
  0xb4   : > { %672 = vrcp.f32 %v998_v53  ;;  %v281_v22 = vor.u32 1.1754944e-38, %v280_v12  ;;  %vm279_vm7 = vcmp.eq.f32.partialorder %v278_v15, 8.507059e+37 }
  0xb5   : > { %v311_v19 = vor.u32 1.1754944e-38, %v310_v7  ;;  %vm309_vm6 = vcmp.eq.f32.partialorder %v308_v13, 8.507059e+37 }
  0xb6   : > { %v260_v60 = vpop.xlane.xlu0 %259 }
  0xb7   : > { %v1004_v63 = vmax.f32 %v260_v60, 1e-05 }
  0xb8   : > { %v264_v59 = vpop.xlane.xlu1 %263 }
  0xb9   : > { %v671_v61 = vpop.eup %670  ;;  %v1002_v62 = vmax.f32 %v264_v59, 1e-05  ;;  %v295_v32 = vand.u32 2147483648, %v1004_v63  ;;  %v293_v38 = vand.u32 2147483647, %v1004_v63  ;;  %vm289_vm12 = vweird.f32 %v1004_v63 }
  0xba   : > { %v673_v1 = vpop.eup %672  ;;  %v300_v2 = vmul.f32 %v671_v61, %v996_v52  ;;  %vm305_vm0 = vweird.f32 %v671_v61 }
  0xbb   : > { %v270_v3 = vmul.f32 %v673_v1, %v998_v53  ;;  %674 = vrcp.f32 %v1002_v62  ;;  %vm275_vm1 = vweird.f32 %v673_v1  ;;  %vm306_vm4 = vmor %vm304_vm2, %vm305_vm0  ;;  %v325_v30 = vand.u32 2147483648, %v1002_v62 }
  0xbc   : > { %v301_v6 = vsub.f32 1.0, %v300_v2  ;;  %676 = vrcp.f32 %v1004_v63  ;;  %vm276_vm5 = vmor %vm274_vm3, %vm275_vm1  ;;  %v323_v35 = vand.u32 2147483647, %v1002_v62  ;;  %vm319_vm10 = vweird.f32 %v1002_v62 }
  0xbd   : > { %v271_v10 = vsub.f32 1.0, %v270_v3  ;;  %v326_v42 = vor.u32 1.1754944e-38, %v325_v30  ;;  %v296_v45 = vor.u32 1.1754944e-38, %v295_v32  ;;  %vm294_vm15 = vcmp.eq.f32.partialorder %v293_v38, 8.507059e+37 }
  0xbe   : > { %v302_v11 = vmul.f32 %v671_v61, %v301_v6  ;;  %vm324_vm14 = vcmp.eq.f32.partialorder %v323_v35, 8.507059e+37 }
  0xbf   : > { %v272_v14 = vmul.f32 %v673_v1, %v271_v10 }
  0xc0   : > { %v303_v16 = vadd.f32 %v671_v61, %v302_v11 }
  0xc1   : > { %v675_v17 = vpop.eup %674  ;;  %v273_v18 = vadd.f32 %v673_v1, %v272_v14 }
  0xc2   : > { %v677_v20 = vpop.eup %676  ;;  %v315_v21 = vmul.f32 %v675_v17, %v1002_v62  ;;  %v307_v23 = vsel %vm306_vm4, %v671_v61, %v303_v16  ;;  %vm320_vm8 = vweird.f32 %v675_v17 }
  0xc3   : > { %v285_v24 = vmul.f32 %v677_v20, %v1004_v63  ;;  %v277_v25 = vsel %vm276_vm5, %v673_v1, %v273_v18  ;;  %v312_v26 = vsel %vm309_vm6, %v311_v19, %v307_v23  ;;  %vm290_vm9 = vweird.f32 %v677_v20  ;;  %vm321_vm11 = vmor %vm319_vm10, %vm320_vm8 }
  0xc4   : > { %v316_v27 = vsub.f32 1.0, %v315_v21  ;;  %v282_v28 = vsel %vm279_vm7, %v281_v22, %v277_v25  ;;  %v313_v29 = vmul.f32 127.0, %v312_v26  ;;  %vm291_vm13 = vmor %vm289_vm12, %vm290_vm9 }
  0xc5   : > { %v286_v31 = vsub.f32 1.0, %v285_v24  ;;  %v283_v33 = vmul.f32 127.0, %v282_v28 }
  0xc6   : > { %v317_v34 = vmul.f32 %v675_v17, %v316_v27  ;;  %v331_v36 = vmul.f32 %v313_v29, %v980_v4 }
  0xc7   : > { %v287_v37 = vmul.f32 %v677_v20, %v286_v31  ;;  %v329_v39 = vmul.f32 %v283_v33, %v982_v5  ;;  %v411_v31 = vstv %s410_s19 }
  0xc8   : > { %v318_v40 = vadd.f32 %v675_v17, %v317_v34  ;;  %v569_v41 = vcvt.f32.s32 %v331_v36  ;;  %v572_v57 = vand.u32 2147483648, %v331_v36  ;;  %v567_v61 = vand.u32 2147483647, %v331_v36 }
  0xc9   : > { %v288_v43 = vadd.f32 %v677_v20, %v287_v37  ;;  %v553_v44 = vcvt.f32.s32 %v329_v39  ;;  %v551_v59 = vand.u32 2147483647, %v329_v39  ;;  %v556_v60 = vand.u32 2147483648, %v329_v39 }
  0xca   : > { %v322_v46 = vsel %vm321_vm11, %v675_v17, %v318_v40  ;;  %v570_v4 = vcvt.s32.f32 %v569_v41  ;;  %vm568_vm1 = vcmp.lt.f32.partialorder %v567_v61, 8388608.0 }
  0xcb   : > { %v292_v47 = vsel %vm291_vm13, %v677_v20, %v288_v43  ;;  %v554_v48 = vcvt.s32.f32 %v553_v44  ;;  %v327_v49 = vsel %vm324_vm14, %v326_v42, %v322_v46  ;;  %vm1028_vm0 = vcmp.lt.f32.partialorder %v551_v59, 8388608.0 }
  0xcc   : > { %v297_v5 = vsel %vm294_vm15, %v296_v45, %v292_v47  ;;  %v328_v50 = vmul.f32 127.0, %v327_v49  ;;  %v571_v51 = vand.u32 2147483647, %v570_v4 }
  0xcd   : > { %v298_v54 = vmul.f32 127.0, %v297_v5  ;;  %v555_v55 = vand.u32 2147483647, %v554_v48 }
  0xce   : > { %v332_v56 = vmul.f32 %v328_v50, %v986_v8  ;;  %v573_v0 = vor.u32 %v572_v57, %v571_v51 }
  0xcf   : > { %v330_v58 = vmul.f32 %v298_v54, %v988_v9  ;;  %v557_v2 = vor.u32 %v556_v60, %v555_v55 }
  0xd0   : > { %v577_v1 = vcvt.f32.s32 %v332_v56  ;;  %v575_v11 = vand.u32 2147483647, %v332_v56  ;;  %v574_v8 = vsel %vm568_vm1, %v573_v0, %v331_v36  ;;  %v580_v14 = vand.u32 2147483648, %v332_v56 }
  0xd1   : > { %v561_v3 = vcvt.f32.s32 %v330_v58  ;;  %v559_v12 = vand.u32 2147483647, %v330_v58  ;;  %v558_v9 = vsel %vm1028_vm0, %v557_v2, %v329_v39  ;;  %v564_v16 = vand.u32 2147483648, %v330_v58 }
  0xd2   : > { %v578_v6 = vcvt.s32.f32 %v577_v1  ;;  %vm576_vm2 = vcmp.lt.f32.partialorder %v575_v11, 8388608.0  ;;  %v339_v19 = vmax.f32 %v574_v8, -128.0  ;;  %v337_v20 = vmax.f32 %v558_v9, -128.0 }
  0xd3   : > { %v562_v10 = vcvt.s32.f32 %v561_v3  ;;  %vm560_vm3 = vcmp.lt.f32.partialorder %v559_v12, 8388608.0 }
  0xd4   : > { %v579_v13 = vand.u32 2147483647, %v578_v6  ;;  %v343_v25 = vmin.f32 %v339_v19, 127.0  ;;  %v341_v27 = vmin.f32 %v337_v20, 127.0 }
  0xd5   : > { %v563_v15 = vand.u32 2147483647, %v562_v10 }
  0xd6   : > { %v581_v17 = vor.u32 %v580_v14, %v579_v13 }
  0xd7   : > { %v565_v18 = vor.u32 %v564_v16, %v563_v15 }
  0xd8   : > { %v582_v21 = vsel %vm576_vm2, %v581_v17, %v332_v56 }
  0xd9   : > { %v566_v22 = vsel %vm560_vm3, %v565_v18, %v330_v58  ;;  %v340_v23 = vmax.f32 %v582_v21, -128.0 }
  0xda   : > { %v338_v24 = vmax.f32 %v566_v22, -128.0 }
  0xdb   : > { %v344_v26 = vmin.f32 %v340_v23, 127.0 }
  0xdc   : > { %v342_v28 = vmin.f32 %v338_v24, 127.0 }
  0xdd   : > { %v346_v29 = vpack.c.bf16 %v344_v26, %v343_v25 }
  0xde   : > { %v345_v30 = vpack.c.bf16 %v342_v28, %v341_v27 }
  0xdf   : > { %404 = vmatmul.bf16.vlgmr.msra.gmra.mxu1 %v346_v29 }
  0xe0   : > { %399 = vmatmul.bf16.vlgmr.msra.gmra.mxu0 %v345_v30 }
 0x15c   : > { %v405_v32 = vpop.f32.mrf.mxu1 }
 0x15d   : > { %v400_v33 = vpop.f32.mrf.mxu0  ;;  %v414_v34 = vmul.f32 %v411_v31, %v405_v32 }
 0x15e   : > { %v412_v35 = vmul.f32 %v411_v31, %v400_v33 }
 0x15f   : > { %v418_v36 = vmul.f32 %v414_v34, %v996_v52 }
 0x160   : > { %v416_v37 = vmul.f32 %v412_v35, %v998_v53 }
 0x161   : > { %422 = vst [vmem:[#allocation9 + $0x10] sm:$0xff] %v418_v36 }
 0x162   : > { %420 = vst [vmem:[#allocation9] sm:$0xff] %v416_v37 }
 0x164   : > { %v407_v38 = vpop.f32.mrf.mxu1 }
 0x165   : > { %v402_v39 = vpop.f32.mrf.mxu0  ;;  %v415_v40 = vmul.f32 %v411_v31, %v407_v38 }
 0x166   : > { %v413_v41 = vmul.f32 %v411_v31, %v402_v39 }
 0x167   : > { %v419_v42 = vmul.f32 %v415_v40, %v1002_v62 }
 0x168   : > { %v417_v52 = vmul.f32 %v413_v41, %v1004_v63 }
 0x169   : > { %423 = vst [vmem:[#allocation9 + $0x18] sm:$0xff] %v419_v42 }
 0x16a   : > { %421 = vst [vmem:[#allocation9 + $0x8] sm:$0xff] %v417_v52 }
 0x16b   : > { %594 = dma.vmem_to_hbm [thread:$0]  (%p613_p1), %s433_s24, 512, %s435_s9, [#allocation4], %s850_s15, %s850_s15, %s851_s11  }
 0x16c   : > { %818 = dma.done.wait (%p613_p1), [#allocation4], 512  }
 0x16d   : > { %820 = vsyncadd (%p613_p1), [#allocation4], 4294966784 }
 0x16e PF: > { %s19_s17 = sadd.s32 1, %s843_s17   ;;  %s1072_s12 = smov %s827_s13 }
 0x16f   : > { %p16_p3 = scmp.ge.s32.totalorder %s19_s17, 5   ;;  %s1073_s13 = smov %s831_s14 }
 0x170   : > { %s1074_s14 = smov %s950_s21  ;;  %s1075_s15 = smov %s839_s16 }
 0x171   : > { %s1076_s16 = smov %s1078_s6  ;;  %18 = sbr.rel (!%p16_p3) target bundleno = 7 (0x7), region = 85 }
 0x176   :  { %451 = vsyncpa [#allocation3], 1 }
 0x177   :  { %453 = vsyncpa [#allocation3 + $0x1], 1 }
 0x178   :  { %454 = vsyncpa [#allocation7], 1 }
 0x179   :  { %456 = vsyncpa [#allocation7 + $0x1], 1 }
 0x17a   :  { %457 = vsyncpa [#allocation4], 1 }
 0x17b   :  { %459 = vsyncpa [#allocation4 + $0x1], 1 }
 0x17c   :  { %460 = vsyncpa [#allocation5], 1 }
 0x17d   :  { %462 = vsyncpa [#allocation5 + $0x1], 1 }

</bundles_post_ra>
